<compile_context>
chip_gen: v5e
topology: v5e:2x2
jax: 0.10.0
libtpu: 0.0.40
codegen_flags: <defaults>
</compile_context>

<pallas_src>
import jax
import jax.numpy as jnp
from jax import lax
from jax.experimental import pallas as pl
from jax.experimental.pallas import tpu as pltpu


def _linreg_kernel(x_ref, w_ref, b_ref, o_ref):
    """One batch tile: o[0, tb] = sum_d w[0, d] * x[tb, d] + b  (lane-dense)."""
    # (1, D) x (TB, D) contracted over D -> (1, TB) directly on the MXU.
    acc = lax.dot_general(
        w_ref[...], x_ref[...],
        dimension_numbers=(((1,), (1,)), ((), ())),
        preferred_element_type=jnp.float32,
    )
    o_ref[...] = (acc + b_ref[0]).astype(o_ref.dtype)  # scalar bias read from SMEM


def _round_down(v, m):
    return (v // m) * m


def linear_regression_forward(x, weight, bias, *, block_b=None):
    """x: (B, D) f32; weight: (1, D) f32 (PyTorch Linear layout); bias: (1,) f32 -> (B, 1)."""
    B, D = x.shape
    assert weight.shape == (1, D)
    assert bias.shape == (1,)

    # --- generation-aware VMEM budget ---------------------------------------
    try:
        vmem_cap = int(pltpu.get_tpu_info().vmem_capacity_bytes)
    except Exception:
        vmem_cap = 64 * 1024 * 1024  # conservative (v7x per-TC) fallback
    # Target per-tile x bytes: ~1/8 of physical VMEM, clamped to [2 MiB, 8 MiB].
    target_tile_bytes = min(max(vmem_cap // 8, 2 * 1024 * 1024), 8 * 1024 * 1024)

    if block_b is None:
        rows_budget = max(_round_down(target_tile_bytes // (4 * D), 128), 128)
        block_b = min(B, rows_budget)
        # Keep >= 2 grid steps for large batches so the "parallel" batch axis
        # can shard across both TensorCores on v7x (harmless on v5e/v6e).
        if B >= 256:
            block_b = min(block_b, max(128, _round_down((B + 1) // 2, 128)))
        if block_b < B:
            block_b = max(_round_down(block_b, 128), 128)

    # Lane-dense output block (1, block_b) requires block_b % 128 == 0 or == B;
    # x block (block_b, D) requires block_b % 8 == 0 or == B.
    assert block_b == B or block_b % 128 == 0, "block_b must be B or a multiple of 128"

    grid = (pl.cdiv(B, block_b),)

    # VMEM footprint: double-buffered x tile + resident weight + output blocks.
    need = 2 * block_b * D * 4 + 2 * D * 4 + 2 * block_b * 4 + (1 << 20)
    vmem_limit = int(min(max(need, 16 * 1024 * 1024), int(vmem_cap * 0.75)))

    cost = pl.CostEstimate(
        flops=2 * B * D,
        transcendentals=0,
        bytes_accessed=4 * (B * D + D + 1 + B),
    )

    out = pl.pallas_call(
        _linreg_kernel,
        out_shape=jax.ShapeDtypeStruct((1, B), x.dtype),
        grid=grid,
        in_specs=[
            # x: one batch tile per grid step; full-extent feature (lane) dim.
            pl.BlockSpec((block_b, D), lambda i: (i, 0)),
            # weight: resident in VMEM across all grid steps.
            pl.BlockSpec((1, D), lambda i: (0, 0)),
            # bias: single scalar in SMEM (no VMEM tile, no per-step DMA).
            pl.BlockSpec(memory_space=pltpu.MemorySpace.SMEM),
        ],
        # Lane-dense output: the batch tile lives along the lane (last) dim.
        out_specs=pl.BlockSpec((1, block_b), lambda i: (0, i)),
        compiler_params=pltpu.CompilerParams(
            dimension_semantics=("parallel",),   # megacore-shardable batch axis (v7x)
            vmem_limit_bytes=vmem_limit,
        ),
        cost_estimate=cost,
    )(x, weight, bias)

    # (1, B) -> (B, 1): same flat ordering, pure metadata reshape in the wrapper.
    return out.reshape(B, 1)


if __name__ == "__main__":
    key = jax.random.PRNGKey(0)
    kx, kw, kb = jax.random.split(key, 3)

    batch = 64
    input_dim = 32

    x = jax.random.normal(kx, (batch, input_dim), dtype=jnp.float32)
    # Deterministic parameter init (mimics nn.Linear's uniform init range).
    bound = 1.0 / (input_dim ** 0.5)
    weight = jax.random.uniform(kw, (1, input_dim), jnp.float32, -bound, bound)
    bias = jax.random.uniform(kb, (1,), jnp.float32, -bound, bound)

    # 1) Default (single-tile) path.
    out = linear_regression_forward(x, weight, bias)
    out = jax.block_until_ready(out)
    ref = x @ weight.T + bias
    assert out.shape == (batch, 1)
    assert jnp.allclose(out, ref, atol=1e-5, rtol=1e-5)

    # 2) Multi-tile, pipelined, "parallel" grid path with a partial last tile.
    batch2 = 200
    x2 = jax.random.normal(jax.random.PRNGKey(1), (batch2, input_dim), dtype=jnp.float32)
    out2 = linear_regression_forward(x2, weight, bias, block_b=128)
    out2 = jax.block_until_ready(out2)
    ref2 = x2 @ weight.T + bias
    assert out2.shape == (batch2, 1)
    assert jnp.allclose(out2, ref2, atol=1e-5, rtol=1e-5)

    print("KERNEL_OK")
</pallas_src>

<mosaic_0001>
module attributes {stable_mosaic.version = 11 : i64} {
  func.func @_linreg_kernel(%arg0: i32, %arg1: memref<64x32xf32, #tpu.memory_space<vmem>>, %arg2: memref<1x32xf32, #tpu.memory_space<vmem>>, %arg3: memref<1xf32, #tpu.memory_space<smem>>, %arg4: memref<1x64xf32, #tpu.memory_space<vmem>>) attributes {dimension_semantics = [#tpu.dimension_semantics<parallel>], iteration_bounds = array<i64: 1>, scalar_prefetch = 0 : i64, scratch_operands = 0 : i64, tpu.core_type = #tpu.core_type<tc>, window_params = [{transform_indices = @transform_0, window_bounds = array<i64: 64, 32>}, {pipeline_mode = #tpu.pipeline_mode<synchronous>, transform_indices = @transform_1, window_bounds = array<i64: 1, 32>}, {transform_indices = @transform_2, window_bounds = array<i64: 1>}, {transform_indices = @transform_3, window_bounds = array<i64: 1, 64>}]} {
    %c0 = arith.constant 0 : index
    %c0_0 = arith.constant 0 : index
    %0 = vector.load %arg2[%c0, %c0_0] : memref<1x32xf32, #tpu.memory_space<vmem>>, vector<1x32xf32>
    %c0_1 = arith.constant 0 : index
    %c0_2 = arith.constant 0 : index
    %1 = vector.load %arg1[%c0_1, %c0_2] : memref<64x32xf32, #tpu.memory_space<vmem>>, vector<64x32xf32>
    %cst = arith.constant dense<0.000000e+00> : vector<1x64xf32>
    %2 = tpu.matmul %0, %1, %cst {dimension_numbers = #tpu.dot_dimension_numbers<[1], [1], [0], [0], [0, 0, 1, 0], [], []>} : vector<1x32xf32>, vector<64x32xf32>, vector<1x64xf32> -> vector<1x64xf32>
    %c0_3 = arith.constant 0 : index
    %3 = memref.load %arg3[%c0_3] : memref<1xf32, #tpu.memory_space<smem>>
    %4 = vector.broadcast %3 : f32 to vector<1x64xf32>
    %5 = arith.addf %2, %4 : vector<1x64xf32>
    %c0_4 = arith.constant 0 : index
    %c0_5 = arith.constant 0 : index
    %6 = vector.load %arg4[%c0_4, %c0_5] : memref<1x64xf32, #tpu.memory_space<vmem>>, vector<1x64xf32>
    tpu.vector_store %arg4[%c0_4, %c0_5], %5 {strides = array<i32>} : memref<1x64xf32, #tpu.memory_space<vmem>>, vector<1x64xf32>,
    return
  }
  func.func @transform_0(%arg0: i32) -> (i32, i32) {
    %c0_i32 = arith.constant 0 : i32
    %c0_i32_0 = arith.constant 0 : i32
    return %arg0, %c0_i32 : i32, i32
  }
  func.func @transform_1(%arg0: i32) -> (i32, i32) {
    %c0_i32 = arith.constant 0 : i32
    %c0_i32_0 = arith.constant 0 : i32
    %c0_i32_1 = arith.constant 0 : i32
    return %c0_i32, %c0_i32_0 : i32, i32
  }
  func.func @transform_2(%arg0: i32) -> i32 {
    %c0_i32 = arith.constant 0 : i32
    %c0_i32_0 = arith.constant 0 : i32
    return %c0_i32 : i32
  }
  func.func @transform_3(%arg0: i32) -> (i32, i32) {
    %c0_i32 = arith.constant 0 : i32
    %c0_i32_0 = arith.constant 0 : i32
    return %c0_i32, %arg0 : i32, i32
  }
}

</mosaic_0001>

<bundles_post_ra>
// kernel: tpu_custom_call.1
= control target key start
LH: loop header
LB: loop body
LE: loop exit
PB: predicated region body
PF: predicated region fallthrough
CT: control target
= control target key end

     0   :  { %vm27_vm0 = vcmask 261120   ;;  %s192_s0 = inlined_call_operand.vmem [shape: f32[64,32], index: 0, kind: input, shape index: {}]   ;;  %s193_s1 = inlined_call_operand.vmem [shape: f32[1,32], index: 1, kind: input, shape index: {}]   ;;  %s194_s2 = inlined_call_operand.<no memory space> [shape: f32[1], index: 2, kind: input, shape index: {}]   ;;  %s195_s3 = inlined_call_operand.hbm [shape: f32[1,64], index: 3, kind: output, shape index: {}]  }
   0x1   :  { %v24_v0 = vld [vmem:[%s192_s0 + $0x38] sm:$0xff]  ;;  %v23_v1 = vld [vmem:[%s192_s0 + $0x30] sm:$0xff] }
   0x2   :  { %93 = vmatpush.xpose.msk.msra.mxu0 %vm27_vm0, %v24_v0 }
   0x3   :  { %9 = vsyncpa [#allocation4], 0  ;;  %v22_v2 = vld [vmem:[%s192_s0 + $0x28] sm:$0xff]  ;;  %v21_v3 = vld [vmem:[%s192_s0 + $0x20] sm:$0xff]  ;;  %v26_v9 = vstv %s194_s2  ;;  %s129_s5 = smov [#allocation3]   ;;  %s84_s9 = sshll.u32 %s195_s3, 4  ;;  %s85_s9 = int_to_ptr.hbm [resolvable:$true] %s84_s9 }
   0x4   :  { %v20_v4 = vld [vmem:[%s192_s0 + $0x18] sm:$0xff]  ;;  %v19_v5 = vld [vmem:[%s192_s0 + $0x10] sm:$0xff]  ;;  %v18_v6 = vld [vmem:[%s192_s0 + $0x8] sm:$0xff]  ;;  %s82_s6 = sshll.u32 %s129_s5, 4  ;;  %vm75_vm1 = vcmask 516096   ;;  %s83_s6 = int_to_ptr.vmem [resolvable:$true] %s82_s6 }
   0x5   :  { %v17_v7 = vld [vmem:[%s192_s0] sm:$0xff] }
   0x6   :  { %94 = vmatpush.xpose.msk.msra.mxu0 %vm27_vm0, %v23_v1  ;;  %v16_v8 = vld [vmem:[%s193_s1] sm:$0x1] }
   0xa   :  { %95 = vmatpush.xpose.msk.msra.mxu0 %vm27_vm0, %v22_v2 }
   0xe   :  { %96 = vmatpush.xpose.msk.msra.mxu0 %vm27_vm0, %v21_v3 }
  0x12   :  { %97 = vmatpush.xpose.msk.msra.mxu0 %vm27_vm0, %v20_v4 }
  0x16   :  { %98 = vmatpush.xpose.msk.msra.mxu0 %vm27_vm0, %v19_v5 }
  0x1a   :  { %99 = vmatpush.xpose.msk.msra.mxu0 %vm27_vm0, %v18_v6 }
  0x1e   :  { %100 = vmatpush.xpose.msk.msra.mxu0 %vm27_vm0, %v17_v7 }
  0x21   :  { %101 = vmatmul.msk.f32.vlgmr.msra.gmra.mxu0 %vm27_vm0, %v16_v8 }
  0x9e   :  { %v72_v10 = vpop.f32.mrf.mxu0 }
  0x9f   :  { %v73_v11 = vadd.f32 %v72_v10, %v26_v9 }
  0xa1   :  { %76 = vst.msk [vmem:[#allocation3] sm:$0x1] %vm75_vm1, %v73_v11 }
  0xa2   :  { %87 = dma.vmem_to_hbm [thread:$0]  %s83_s6, 16, %s85_s9, [#allocation4]  }
  0xa3   :  { %127 = dma.done.wait [#allocation4], 16  }
  0xa4   :  { %128 = vsyncadd [#allocation4], 4294967280 }
  0xa5   :  { %92 = vsyncpa [#allocation4], 1 }

</bundles_post_ra>
